<compile_context>
chip_gen: v6e
topology: v6e:2x2x1
jax: 0.10.0
libtpu: 0.0.40
codegen_flags: <defaults>
</compile_context>

<pallas_src>
import functools

import jax
import jax.numpy as jnp
from jax.experimental import pallas as pl
from jax.experimental.pallas import tpu as pltpu


def _window_norm_kernel(x_ref, side_ref, o_ref, *, T, window_size, eps,
                        pad_left, pad_right):
    x = x_ref[...].astype(jnp.float32)            # (TR, P) packed rows
    P = x.shape[-1]
    g = P // T                                    # sub-rows packed per lane row

    side = side_ref[...]                          # (TR, 3): [seq_len, gamma, beta]
    seq_len = side[:, 0:1].astype(jnp.int32)      # (TR, 1)
    gamma = side[:, 1:2]                          # (TR, 1)
    beta = side[:, 2:3]                           # (TR, 1)

    # Per-lane time index within each packed sub-row, built on a (1, P) tile
    # (no integer div/rem; sublane broadcast against (TR, P) operands is free).
    col = jax.lax.broadcasted_iota(jnp.int32, (1, P), 1)
    for _ in range(g - 1):
        col = jnp.where(col >= T, col - T, col)

    valid = col < seq_len                         # (TR, P) bool sequence mask
    xm = jnp.where(valid, x, 0.0)

    # Zero-padded (side='both') sliding-window sums along time.  One roll per
    # tap is shared between both statistics.
    sum_x = xm
    sum_x2 = xm * xm
    for k in range(1, pad_left + 1):              # contributions from x[t-k]
        rm = jnp.where(col >= k, pltpu.roll(xm, k, axis=1), 0.0)
        sum_x = sum_x + rm
        sum_x2 = sum_x2 + rm * rm
    for k in range(1, pad_right + 1):             # contributions from x[t+k]
        rm = jnp.where(col < T - k, pltpu.roll(xm, (P - k) % P, axis=1), 0.0)
        sum_x = sum_x + rm
        sum_x2 = sum_x2 + rm * rm

    # signal_fraction * window_size, analytically from seq_len (number of
    # non-padded in-sequence positions inside the window at t).
    lo = jnp.maximum(col - pad_left, 0)
    hi = jnp.minimum(jnp.minimum(col + pad_right, T - 1), seq_len - 1)
    cnt = jnp.maximum(hi - lo + 1, 0).astype(jnp.float32)

    # mean = (sum/W) / (cnt/W + 1e-6) == sum / (cnt + W*1e-6); reciprocal on
    # the EUP + one Newton step (full f32 precision, no VALU divide).
    denom = cnt + float(window_size) * 1e-6
    inv = pl.reciprocal(denom, approx=True)
    inv = inv * (2.0 - denom * inv)

    mean = sum_x * inv                            # shift branch
    power = sum_x2 * inv - mean * mean            # scale branch (shift=True)

    y = (x - mean) * jax.lax.rsqrt(power + eps)   # rsqrt -> EUP slot
    y = y * gamma + beta                          # per-channel affine
    o_ref[...] = jnp.where(valid, y, 0.0).astype(o_ref.dtype)


def window_norm(x, gamma, beta, seq_len=None, *, window_size=3, eps=1e-3,
                target_block_bytes=2 * 1024 * 1024,
                vmem_limit_bytes=40 * 1024 * 1024):
    """WindowNorm forward.  x: (B, C, F, T); gamma/beta: (C,)."""
    B, C, F, T = x.shape
    assert T >= window_size, (T, window_size)
    pad_left = (window_size - 1) // 2
    pad_right = (window_size - 1) - pad_left

    R = B * C * F
    # Lane packing factor: largest divisor of F with g*T <= 128.  g | F keeps
    # (batch, channel) constant within each packed row.
    if T >= 128:
        g = 1
    else:
        cap = max(1, 128 // T)
        g = 1
        for d in range(min(cap, F), 0, -1):
            if F % d == 0:
                g = d
                break
    P = g * T
    RP = R // g
    xp = x.reshape(RP, P)                         # row-major -> free reshape

    # Per-packed-row side table [seq_len, gamma, beta] (tiny: RP x 3 floats).
    prows = jnp.arange(RP, dtype=jnp.int32)
    row_c = (prows * g // F) % C
    gamma_col = gamma.astype(jnp.float32)[row_c]
    beta_col = beta.astype(jnp.float32)[row_c]
    if seq_len is None:
        len_col = jnp.full((RP,), float(T), dtype=jnp.float32)
    else:
        row_b = (prows * g) // (C * F)
        len_col = jnp.asarray(seq_len).astype(jnp.float32)[row_b]
    side = jnp.stack([len_col, gamma_col, beta_col], axis=1)   # (RP, 3)

    # Block sizing: big (<= ~2 MiB) lane-dense blocks to amortize per-step
    # overhead, but aim for >= 4 grid steps so the "parallel" axis splits
    # across both v7x TensorCores and the pipeline stays warm.  The partial
    # final block (RP % tr != 0) is clipped by Pallas -> no jnp.pad / slice.
    itemsize = jnp.dtype(x.dtype).itemsize
    sub = 16 if itemsize == 2 else 8              # bf16 needs (16,128) tiling
    bytes_per_row = max(1, P * itemsize)
    rows_fit = max(sub, (target_block_bytes // bytes_per_row) // sub * sub)
    rows_quarter = max(sub, (-(-RP // 4) + sub - 1) // sub * sub)
    tr = min(rows_fit, rows_quarter)
    if tr >= RP:
        tr = RP                                   # single full-extent block
        n_blocks = 1
    else:
        n_blocks = -(-RP // tr)

    kernel = functools.partial(
        _window_norm_kernel, T=T, window_size=window_size, eps=eps,
        pad_left=pad_left, pad_right=pad_right)

    out = pl.pallas_call(
        kernel,
        out_shape=jax.ShapeDtypeStruct((RP, P), x.dtype),
        grid=(n_blocks,),
        in_specs=[
            pl.BlockSpec((tr, P), lambda i: (i, 0)),   # packed activations
            pl.BlockSpec((tr, 3), lambda i: (i, 0)),   # [len, gamma, beta]
        ],
        out_specs=pl.BlockSpec((tr, P), lambda i: (i, 0)),
        compiler_params=pltpu.CompilerParams(
            dimension_semantics=("parallel",),
            vmem_limit_bytes=vmem_limit_bytes),
    )(xp, side)

    return out.reshape(B, C, F, T)


def compute_mask(x, seq_len, batch_axis=0, sequence_axis=-1):
    """JAX port of padertorch compute_mask (full-shape 0/1 mask) — reference only."""
    if seq_len is None:
        return jnp.ones_like(x)
    seq_len = jnp.asarray(seq_len)
    T = x.shape[sequence_axis]
    idx_shape = [1] * x.ndim
    idx_shape[sequence_axis] = T
    idx = jnp.arange(T).reshape(idx_shape)
    sl_shape = [1] * x.ndim
    sl_shape[batch_axis] = x.shape[batch_axis]
    sl = seq_len.reshape(sl_shape)
    return jnp.broadcast_to(idx < sl, x.shape).astype(x.dtype)


def window_norm_ref(x, gamma, beta, seq_len=None, *, window_size=3, eps=1e-3):
    """Pure-JAX reference mirroring the torch Pad + AvgPool1d semantics."""
    B, C, F, T = x.shape
    pad_left = (window_size - 1) // 2
    pad_right = (window_size - 1) - pad_left
    mask = compute_mask(x, seq_len)
    xm = x * mask
    pad = ((0, 0), (0, 0), (0, 0), (pad_left, pad_right))
    xp = jnp.pad(xm, pad)
    mp = jnp.pad(mask, pad)

    def pool(a):
        return sum(a[..., k:k + T] for k in range(window_size)) / window_size

    sf = pool(mp)
    mean = pool(xp) / (sf + 1e-6)
    power = pool(xp * xp) / (sf + 1e-6) - mean ** 2
    y = (x - mean) / jnp.sqrt(power + eps)
    y = y * gamma.reshape(1, C, 1, 1) + beta.reshape(1, C, 1, 1)
    return y * mask


if __name__ == "__main__":
    key = jax.random.PRNGKey(0)
    k1, k2, k3, k4 = jax.random.split(key, 4)

    # Case 1: module-default shapes, window_size=3, masked sequences.
    # Lane-packed: g=8, packed block width 128 (fully lane-dense).
    B, C, F, T = 2, 4, 16, 16
    x = jax.random.normal(k1, (B, C, F, T), dtype=jnp.float32)
    gamma = 1.0 + 0.1 * jax.random.normal(k2, (C,), dtype=jnp.float32)
    beta = 0.1 * jax.random.normal(k3, (C,), dtype=jnp.float32)
    seq_len = jnp.array([16, 11], dtype=jnp.int32)

    out = window_norm(x, gamma, beta, seq_len=seq_len, window_size=3, eps=1e-3)
    out = jax.block_until_ready(out)
    ref = window_norm_ref(x, gamma, beta, seq_len=seq_len,
                          window_size=3, eps=1e-3)
    assert out.shape == (B, C, F, T)
    assert jnp.allclose(out, ref, atol=2e-4, rtol=2e-4), \
        float(jnp.max(jnp.abs(out - ref)))

    # Case 2: odd sizes (g=5, packed width 100, partial-block rows), window 5.
    B2, C2, F2, T2 = 2, 3, 5, 20
    x2 = jax.random.normal(k4, (B2, C2, F2, T2), dtype=jnp.float32)
    gamma2 = jnp.linspace(0.8, 1.2, C2, dtype=jnp.float32)
    beta2 = jnp.linspace(-0.1, 0.1, C2, dtype=jnp.float32)
    seq_len2 = jnp.array([20, 13], dtype=jnp.int32)

    out2 = window_norm(x2, gamma2, beta2, seq_len=seq_len2,
                       window_size=5, eps=1e-3)
    out2 = jax.block_until_ready(out2)
    ref2 = window_norm_ref(x2, gamma2, beta2, seq_len=seq_len2,
                           window_size=5, eps=1e-3)
    assert out2.shape == (B2, C2, F2, T2)
    assert jnp.allclose(out2, ref2, atol=2e-4, rtol=2e-4), \
        float(jnp.max(jnp.abs(out2 - ref2)))

    # Case 3: T >= 128 (no packing, g=1) and seq_len=None.
    B3, C3, F3, T3 = 2, 2, 4, 128
    x3 = jax.random.normal(jax.random.PRNGKey(7), (B3, C3, F3, T3),
                           dtype=jnp.float32)
    gamma3 = jnp.ones((C3,), dtype=jnp.float32)
    beta3 = jnp.zeros((C3,), dtype=jnp.float32)
    out3 = window_norm(x3, gamma3, beta3, seq_len=None, window_size=3, eps=1e-3)
    out3 = jax.block_until_ready(out3)
    ref3 = window_norm_ref(x3, gamma3, beta3, seq_len=None,
                           window_size=3, eps=1e-3)
    assert jnp.allclose(out3, ref3, atol=2e-4, rtol=2e-4), \
        float(jnp.max(jnp.abs(out3 - ref3)))

    print("KERNEL_OK")
</pallas_src>

<mosaic_0001>
module attributes {stable_mosaic.version = 11 : i64} {
  func.func @_window_norm_kernel(%arg0: i32, %arg1: memref<8x128xf32, #tpu.memory_space<vmem>>, %arg2: memref<8x3xf32, #tpu.memory_space<vmem>>, %arg3: memref<8x128xf32, #tpu.memory_space<vmem>>) attributes {dimension_semantics = [#tpu.dimension_semantics<parallel>], iteration_bounds = array<i64: 2>, scalar_prefetch = 0 : i64, scratch_operands = 0 : i64, tpu.core_type = #tpu.core_type<tc>, window_params = [{transform_indices = @transform_0, window_bounds = array<i64: 8, 128>}, {transform_indices = @transform_1, window_bounds = array<i64: 8, 3>}, {transform_indices = @transform_2, window_bounds = array<i64: 8, 128>}]} {
    %c0 = arith.constant 0 : index
    %c0_0 = arith.constant 0 : index
    %0 = vector.load %arg1[%c0, %c0_0] : memref<8x128xf32, #tpu.memory_space<vmem>>, vector<8x128xf32>
    %c0_1 = arith.constant 0 : index
    %c0_2 = arith.constant 0 : index
    %1 = vector.load %arg2[%c0_1, %c0_2] : memref<8x3xf32, #tpu.memory_space<vmem>>, vector<8x3xf32>
    %2 = vector.extract_strided_slice %1 {offsets = [0, 0], sizes = [8, 1], strides = [1, 1]} : vector<8x3xf32> to vector<8x1xf32>
    %3 = arith.fptosi %2 : vector<8x1xf32> to vector<8x1xi32>
    %4 = vector.extract_strided_slice %1 {offsets = [0, 1], sizes = [8, 1], strides = [1, 1]} : vector<8x3xf32> to vector<8x1xf32>
    %5 = vector.extract_strided_slice %1 {offsets = [0, 2], sizes = [8, 1], strides = [1, 1]} : vector<8x3xf32> to vector<8x1xf32>
    %6 = tpu.iota {dimensions = array<i32: 1>} : vector<1x128xi32>
    %c16_i32 = arith.constant 16 : i32
    %7 = vector.broadcast %c16_i32 : i32 to vector<1x128xi32>
    %8 = arith.cmpi sge, %6, %7 : vector<1x128xi32>
    %c16_i32_3 = arith.constant 16 : i32
    %9 = vector.broadcast %c16_i32_3 : i32 to vector<1x128xi32>
    %10 = arith.subi %6, %9 : vector<1x128xi32>
    %11 = arith.select %8, %10, %6 : vector<1x128xi1>, vector<1x128xi32>
    %c16_i32_4 = arith.constant 16 : i32
    %12 = vector.broadcast %c16_i32_4 : i32 to vector<1x128xi32>
    %13 = arith.cmpi sge, %11, %12 : vector<1x128xi32>
    %c16_i32_5 = arith.constant 16 : i32
    %14 = vector.broadcast %c16_i32_5 : i32 to vector<1x128xi32>
    %15 = arith.subi %11, %14 : vector<1x128xi32>
    %16 = arith.select %13, %15, %11 : vector<1x128xi1>, vector<1x128xi32>
    %c16_i32_6 = arith.constant 16 : i32
    %17 = vector.broadcast %c16_i32_6 : i32 to vector<1x128xi32>
    %18 = arith.cmpi sge, %16, %17 : vector<1x128xi32>
    %c16_i32_7 = arith.constant 16 : i32
    %19 = vector.broadcast %c16_i32_7 : i32 to vector<1x128xi32>
    %20 = arith.subi %16, %19 : vector<1x128xi32>
    %21 = arith.select %18, %20, %16 : vector<1x128xi1>, vector<1x128xi32>
    %c16_i32_8 = arith.constant 16 : i32
    %22 = vector.broadcast %c16_i32_8 : i32 to vector<1x128xi32>
    %23 = arith.cmpi sge, %21, %22 : vector<1x128xi32>
    %c16_i32_9 = arith.constant 16 : i32
    %24 = vector.broadcast %c16_i32_9 : i32 to vector<1x128xi32>
    %25 = arith.subi %21, %24 : vector<1x128xi32>
    %26 = arith.select %23, %25, %21 : vector<1x128xi1>, vector<1x128xi32>
    %c16_i32_10 = arith.constant 16 : i32
    %27 = vector.broadcast %c16_i32_10 : i32 to vector<1x128xi32>
    %28 = arith.cmpi sge, %26, %27 : vector<1x128xi32>
    %c16_i32_11 = arith.constant 16 : i32
    %29 = vector.broadcast %c16_i32_11 : i32 to vector<1x128xi32>
    %30 = arith.subi %26, %29 : vector<1x128xi32>
    %31 = arith.select %28, %30, %26 : vector<1x128xi1>, vector<1x128xi32>
    %c16_i32_12 = arith.constant 16 : i32
    %32 = vector.broadcast %c16_i32_12 : i32 to vector<1x128xi32>
    %33 = arith.cmpi sge, %31, %32 : vector<1x128xi32>
    %c16_i32_13 = arith.constant 16 : i32
    %34 = vector.broadcast %c16_i32_13 : i32 to vector<1x128xi32>
    %35 = arith.subi %31, %34 : vector<1x128xi32>
    %36 = arith.select %33, %35, %31 : vector<1x128xi1>, vector<1x128xi32>
    %c16_i32_14 = arith.constant 16 : i32
    %37 = vector.broadcast %c16_i32_14 : i32 to vector<1x128xi32>
    %38 = arith.cmpi sge, %36, %37 : vector<1x128xi32>
    %c16_i32_15 = arith.constant 16 : i32
    %39 = vector.broadcast %c16_i32_15 : i32 to vector<1x128xi32>
    %40 = arith.subi %36, %39 : vector<1x128xi32>
    %41 = arith.select %38, %40, %36 : vector<1x128xi1>, vector<1x128xi32>
    %42 = vector.broadcast %41 : vector<1x128xi32> to vector<8x128xi32>
    %43 = vector.broadcast %3 : vector<8x1xi32> to vector<8x128xi32>
    %44 = arith.cmpi slt, %42, %43 : vector<8x128xi32>
    %cst = arith.constant 0.000000e+00 : f32
    %45 = vector.broadcast %cst : f32 to vector<8x128xf32>
    %46 = arith.select %44, %0, %45 : vector<8x128xi1>, vector<8x128xf32>
    %47 = arith.mulf %46, %46 : vector<8x128xf32>
    %c1_i32 = arith.constant 1 : i32
    %48 = vector.broadcast %c1_i32 : i32 to vector<1x128xi32>
    %49 = arith.cmpi sge, %41, %48 : vector<1x128xi32>
    %c1_i32_16 = arith.constant 1 : i32
    %50 = tpu.dynamic_rotate %46 by %c1_i32_16 dim 1 : vector<8x128xf32>, i32 -> vector<8x128xf32>
    %cst_17 = arith.constant 0.000000e+00 : f32
    %51 = vector.shape_cast %49 : vector<1x128xi1> to vector<1x128xi1>
    %52 = vector.broadcast %51 : vector<1x128xi1> to vector<8x128xi1>
    %53 = vector.broadcast %cst_17 : f32 to vector<8x128xf32>
    %54 = arith.select %52, %50, %53 : vector<8x128xi1>, vector<8x128xf32>
    %55 = arith.addf %46, %54 : vector<8x128xf32>
    %56 = arith.mulf %54, %54 : vector<8x128xf32>
    %57 = arith.addf %47, %56 : vector<8x128xf32>
    %c15_i32 = arith.constant 15 : i32
    %58 = vector.broadcast %c15_i32 : i32 to vector<1x128xi32>
    %59 = arith.cmpi slt, %41, %58 : vector<1x128xi32>
    %c127_i32 = arith.constant 127 : i32
    %60 = tpu.dynamic_rotate %46 by %c127_i32 dim 1 : vector<8x128xf32>, i32 -> vector<8x128xf32>
    %cst_18 = arith.constant 0.000000e+00 : f32
    %61 = vector.shape_cast %59 : vector<1x128xi1> to vector<1x128xi1>
    %62 = vector.broadcast %61 : vector<1x128xi1> to vector<8x128xi1>
    %63 = vector.broadcast %cst_18 : f32 to vector<8x128xf32>
    %64 = arith.select %62, %60, %63 : vector<8x128xi1>, vector<8x128xf32>
    %65 = arith.addf %55, %64 : vector<8x128xf32>
    %66 = arith.mulf %64, %64 : vector<8x128xf32>
    %67 = arith.addf %57, %66 : vector<8x128xf32>
    %c1_i32_19 = arith.constant 1 : i32
    %68 = vector.broadcast %c1_i32_19 : i32 to vector<1x128xi32>
    %69 = arith.subi %41, %68 : vector<1x128xi32>
    %c0_i32 = arith.constant 0 : i32
    %70 = vector.broadcast %c0_i32 : i32 to vector<1x128xi32>
    %71 = arith.maxsi %69, %70 : vector<1x128xi32>
    %c1_i32_20 = arith.constant 1 : i32
    %72 = vector.broadcast %c1_i32_20 : i32 to vector<1x128xi32>
    %73 = arith.addi %41, %72 : vector<1x128xi32>
    %c15_i32_21 = arith.constant 15 : i32
    %74 = vector.broadcast %c15_i32_21 : i32 to vector<1x128xi32>
    %75 = arith.minsi %73, %74 : vector<1x128xi32>
    %c1_i32_22 = arith.constant 1 : i32
    %76 = vector.broadcast %c1_i32_22 : i32 to vector<8x1xi32>
    %77 = arith.subi %3, %76 : vector<8x1xi32>
    %78 = vector.broadcast %75 : vector<1x128xi32> to vector<8x128xi32>
    %79 = vector.broadcast %77 : vector<8x1xi32> to vector<8x128xi32>
    %80 = arith.minsi %78, %79 : vector<8x128xi32>
    %81 = vector.broadcast %71 : vector<1x128xi32> to vector<8x128xi32>
    %82 = arith.subi %80, %81 : vector<8x128xi32>
    %c1_i32_23 = arith.constant 1 : i32
    %83 = vector.broadcast %c1_i32_23 : i32 to vector<8x128xi32>
    %84 = arith.addi %82, %83 : vector<8x128xi32>
    %c0_i32_24 = arith.constant 0 : i32
    %85 = vector.broadcast %c0_i32_24 : i32 to vector<8x128xi32>
    %86 = arith.maxsi %84, %85 : vector<8x128xi32>
    %87 = arith.sitofp %86 : vector<8x128xi32> to vector<8x128xf32>
    %cst_25 = arith.constant 3.000000e-06 : f32
    %88 = vector.broadcast %cst_25 : f32 to vector<8x128xf32>
    %89 = arith.addf %87, %88 : vector<8x128xf32>
    %90 = tpu.reciprocal %89 {approx = true} : vector<8x128xf32> -> vector<8x128xf32>
    %91 = arith.mulf %89, %90 : vector<8x128xf32>
    %cst_26 = arith.constant 2.000000e+00 : f32
    %92 = vector.broadcast %cst_26 : f32 to vector<8x128xf32>
    %93 = arith.subf %92, %91 : vector<8x128xf32>
    %94 = arith.mulf %90, %93 : vector<8x128xf32>
    %95 = arith.mulf %65, %94 : vector<8x128xf32>
    %96 = arith.mulf %67, %94 : vector<8x128xf32>
    %97 = arith.mulf %95, %95 : vector<8x128xf32>
    %98 = arith.subf %96, %97 : vector<8x128xf32>
    %99 = arith.subf %0, %95 : vector<8x128xf32>
    %cst_27 = arith.constant 1.000000e-03 : f32
    %100 = vector.broadcast %cst_27 : f32 to vector<8x128xf32>
    %101 = arith.addf %98, %100 : vector<8x128xf32>
    %102 = math.rsqrt %101 : vector<8x128xf32>
    %103 = arith.mulf %99, %102 : vector<8x128xf32>
    %104 = vector.broadcast %4 : vector<8x1xf32> to vector<8x128xf32>
    %105 = arith.mulf %103, %104 : vector<8x128xf32>
    %106 = vector.broadcast %5 : vector<8x1xf32> to vector<8x128xf32>
    %107 = arith.addf %105, %106 : vector<8x128xf32>
    %cst_28 = arith.constant 0.000000e+00 : f32
    %108 = vector.broadcast %cst_28 : f32 to vector<8x128xf32>
    %109 = arith.select %44, %107, %108 : vector<8x128xi1>, vector<8x128xf32>
    %c0_29 = arith.constant 0 : index
    %c0_30 = arith.constant 0 : index
    %110 = vector.load %arg3[%c0_29, %c0_30] : memref<8x128xf32, #tpu.memory_space<vmem>>, vector<8x128xf32>
    tpu.vector_store %arg3[%c0_29, %c0_30], %109 {strides = array<i32>} : memref<8x128xf32, #tpu.memory_space<vmem>>, vector<8x128xf32>,
    return
  }
  func.func @transform_0(%arg0: i32) -> (i32, i32) {
    %c0_i32 = arith.constant 0 : i32
    %c0_i32_0 = arith.constant 0 : i32
    return %arg0, %c0_i32 : i32, i32
  }
  func.func @transform_1(%arg0: i32) -> (i32, i32) {
    %c0_i32 = arith.constant 0 : i32
    %c0_i32_0 = arith.constant 0 : i32
    return %arg0, %c0_i32 : i32, i32
  }
  func.func @transform_2(%arg0: i32) -> (i32, i32) {
    %c0_i32 = arith.constant 0 : i32
    %c0_i32_0 = arith.constant 0 : i32
    return %arg0, %c0_i32 : i32, i32
  }
}

</mosaic_0001>

<bundles_post_ra>
// kernel: tpu_custom_call.1
= control target key start
LH: loop header
LB: loop body
LE: loop exit
PB: predicated region body
PF: predicated region fallthrough
CT: control target
= control target key end

     0   :  { %7 = vsyncpa [#allocation3], 0  ;;  %s607_s0 = inlined_call_operand.vmem [shape: f32[16,128], index: 0, kind: input, shape index: {}]   ;;  %s608_s1 = inlined_call_operand.vmem [shape: f32[16,3], index: 1, kind: input, shape index: {}]   ;;  %s609_s2 = inlined_call_operand.hbm [shape: f32[16,128], index: 2, kind: output, shape index: {}]  }
   0x1   :  { %9 = vsyncpa [#allocation3 + $0x1], 0  ;;  %s493_s9 = smov 0   ;;  %s495_s10 = smov 0  }
   0x2   :  { %s497_s11 = smov 0   ;;  %s499_s12 = smov 0  }
   0x3 LB: > { %s514_s13 = sadd.s32 4294967295, %s470_s12   ;;  %s334_s14 = sadd.s32 4294967294, %s470_s12   ;;  %s470_s12 = sphi %s499_s12, %s615_s12   ;;  %s466_s11 = sphi %s497_s11, %s614_s11   ;;  %s462_s10 = sphi %s495_s10, %s613_s10   ;;  %s458_s9 = sphi %s493_s9, %s612_s9  }
   0x4   : > { %s518_s15 = sadd.s32 1, %s470_s12   ;;  %s74_s16 = sadd.s32 1, %s466_s11 }
   0x5   : > { %s71_s17 = ssub.s32 %s470_s12, %s518_s15  ;;  %p84_p0 = scmp.ne.s32.totalorder %s466_s11, %s462_s10 }
   0x6   : > { %p72_p1 = scmp.eq.s32.totalorder %s71_s17, 0  ;;  %p85_p2 = scmp.eq.s32.totalorder %s514_s13, 1 }
   0x7   : > { %p90_p3 = scmp.ne.s32.totalorder %s462_s10, %s458_s9  ;;  %p91_p4 = scmp.eq.s32.totalorder %s334_s14, 1 }
   0x8   : > { %s529_s18 = scalar_select %p72_p1, %s466_s11, %s74_s16  }
   0x9   : > { %p531_p5 = por %p85_p2, %p84_p0  ;;  %p535_p6 = por %p91_p4, %p90_p3 }
   0xa   : > { %p337_p7 = scmp.ge.s32.totalorder %s470_s12, 1  ;;  %p123_p8 = scmp.lt.s32.totalorder %s470_s12, 3 }
   0xc   : > { %p124_p9 = pnand %p337_p7, %p123_p8 }
   0xd   : > { %p148_p10 = scmp.lt.s32.totalorder (!%p124_p9), %s514_s13, 1  ;;  %s475_s29 = smov (!%p124_p9), 1  }
   0xe   : > { %127 = sbr.rel (%p124_p9) target bundleno = 318 (0x13e), region = 28  ;;  %s476_s30 = smov (!%p124_p9), 127  }
   0xf   : > { %s145_s3 = sand.u32 (!%p124_p9), 1, %s462_s10   ;;  %s353_s5 = sshll.u32 (!%p124_p9), %s514_s13, 7 }
  0x10   : > { %s338_s4 = sshll.u32 (!%p124_p9), %s145_s3, 3  ;;  %s570_s16 = scalar_lea.hbm (!%p124_p9), %s609_s2, %s353_s5 }
  0x11   : > { %s147_s6 = scalar_lea.vmem (!%p124_p9), [#allocation2], %s338_s4  ;;  %s250_s17 = scalar_lea.sflag (!%p124_p9), [#allocation3], %s145_s3 }
  0x12   : > { %s263_s7 = sshll.u32 (!%p124_p9), %s147_s6, 4  ;;  %s264_s7 = int_to_ptr.vmem [resolvable:$true] %s263_s7 }
  0x13   : > { %v472_v0 = vmov 0   ;;  %s543_s21 = scalar_select %p148_p10, %s514_s13, 1  ;;  %v473_v5 = vmov 1   ;;  %v474_v6 = vmov 2   ;;  %v159_v7 = vlaneseq }
  0x14   : > { %402 = vset.pattern.permute.xlu0 %v472_v0  ;;  %404 = vset.pattern.permute.xlu1 %v474_v6  ;;  %s477_s13 = smov [#allocation2]  }
  0x15   : > { %s339_s22 = sshll.u32 %s543_s21, 3  ;;  %v160_v8 = vand.u32 127, %v159_v7  ;;  %s410_s21 = scalar_lea.vmem %s264_s7, 128 }
  0x16   : > { %s155_s25 = scalar_lea.vmem %s608_s1, %s339_s22  ;;  %s151_s28 = scalar_lea.vmem %s607_s0, %s339_s22 }
  0x17   : > { %v157_v1 = vld [vmem:[%s155_s25] sm:$0xff]  ;;  %v341_v9 = vadd.s32 4294967280, %v160_v8  ;;  %vm161_vm0 = vcmp.ge.s32.totalorder %v160_v8, 16  ;;  %p411_p11 = scmp.ne.s32.totalorder %s264_s7, %s410_s21  ;;  %s414_s22 = sshll.u32 %s477_s13, 4  ;;  %s415_s22 = int_to_ptr.vmem [resolvable:$false] %s414_s22 }
  0x18   : > { %v356_v2 = vtrunc.f32 %v157_v1  ;;  %v156_v23 = vld [vmem:[%s151_s28] sm:$0xff]  ;;  %s416_s23 = scalar_lea.vmem %s415_s22, 256  ;;  %p417_p0 = scmp.lt.s32.totalorder %s264_s7, %s415_s22 }
  0x19   : > { %v163_v10 = vsel %vm161_vm0, %v341_v9, %v160_v8  ;;  %p412_p12 = pnand %p411_p11, %p531_p5  ;;  %p418_p1 = scmp.lt.s32.totalorder %s416_s23, %s410_s21 }
  0x1a   : > { %v357_v3 = vcvt.f32.s32 %v356_v2  ;;  %v342_v11 = vadd.s32 4294967280, %v163_v10  ;;  %vm164_vm1 = vcmp.ge.s32.totalorder %v163_v10, 16 }
  0x1b   : > { %p413_p13 = pneg %p412_p12  ;;  %p419_p2 = por %p418_p1, %p417_p0 }
  0x1c   : > { %183 = vperm.xlu0 %402, %v357_v3   ;;  %v349_v4 = vadd.s32 4294967295, %v357_v3  ;;  %v166_v12 = vsel %vm164_vm1, %v342_v11, %v163_v10 }
  0x1d   : > { %v343_v13 = vadd.s32 4294967280, %v166_v12  ;;  %vm167_vm2 = vcmp.ge.s32.totalorder %v166_v12, 16  ;;  %p420_p3 = pnand %p419_p2, %p413_p13 }
  0x1f   : > { %v169_v14 = vsel %vm167_vm2, %v343_v13, %v166_v12 }
  0x20   : > { %214 = vperm.xlu0 %402, %v349_v4   ;;  %v344_v15 = vadd.s32 4294967280, %v169_v14  ;;  %vm170_vm3 = vcmp.ge.s32.totalorder %v169_v14, 16 }
  0x22   : > { %v172_v16 = vsel %vm170_vm3, %v344_v15, %v169_v14 }
  0x23   : > { %v345_v17 = vadd.s32 4294967280, %v172_v16  ;;  %vm173_vm4 = vcmp.ge.s32.totalorder %v172_v16, 16 }
  0x24   : > { %403 = vset.pattern.permute.xlu0 %v473_v5 }
  0x25   : > { %238 = vperm.xlu0 %403, %v157_v1   ;;  %v175_v18 = vsel %vm173_vm4, %v345_v17, %v172_v16 }
  0x26   : > { %v346_v19 = vadd.s32 4294967280, %v175_v18  ;;  %vm176_vm5 = vcmp.ge.s32.totalorder %v175_v18, 16 }
  0x28   : > { %v178_v20 = vsel %vm176_vm5, %v346_v19, %v175_v18 }
  0x29   : > { %405 = vset.pattern.permute.xlu0 %v474_v6  ;;  %v347_v21 = vadd.s32 4294967280, %v178_v20  ;;  %vm179_vm6 = vcmp.ge.s32.totalorder %v178_v20, 16 }
  0x2b   : > { %v556_v22 = vsel %vm179_vm6, %v347_v21, %v178_v20 }
  0x2c   : > { %v209_v26 = vadd.s32 1, %v556_v22  ;;  %v348_v27 = vadd.s32 4294967295, %v556_v22  ;;  %vm188_vm12 = vcmp.ge.s32.totalorder %v556_v22, 1  ;;  %vm197_vm13 = vcmp.lt.s32.totalorder %v556_v22, 15 }
  0x2e   : > { %vm210_vm8 = vcmp.lt.s32.totalorder %v209_v26, 15  ;;  %vm207_vm9 = vcmp.gt.s32.totalorder %v348_v27, 0 }
  0x2f   : > { %v211_v28 = vsel %vm210_vm8, %v209_v26, 15  ;;  %v208_v30 = vsel %vm207_vm9, %v348_v27, 0 }
  0x97   : > { %v184_v24 = vpop.permute.xlu0 %183 }
  0x98   : > { %vm185_vm7 = vcmp.lt.s32.totalorder %v556_v22, %v184_v24 }
  0x99   : > { %v186_v25 = vsel %vm185_vm7, %v156_v23, 0.0 }
  0x9a   : > { %189 = vrot.lane.b32.xlu1 %v186_v25, %s475_s29  ;;  %v187_v43 = vmul.f32 %v186_v25, %v186_v25 }
  0x9b   : > { %v215_v29 = vpop.permute.xlu0 %214 }
  0x9c   : > { %vm216_vm10 = vcmp.lt.s32.totalorder %v211_v28, %v215_v29 }
  0x9d   : > { %v217_v31 = vsel %vm216_vm10, %v211_v28, %v215_v29 }
  0x9e   : > { %198 = vrot.lane.b32.xlu1 %v186_v25, %s476_s30  ;;  %v218_v32 = vsub.s32 %v217_v31, %v208_v30 }
  0xa0   : > { %v219_v33 = vadd.s32 1, %v218_v32  ;;  %v239_v59 = vpop.permute.xlu0 %238 }
  0xa2   : > { %243 = vperm.xlu1 %404, %v157_v1   ;;  %v350_v34 = vcvt.s32.f32 %v219_v33  ;;  %vm220_vm11 = vcmp.gt.s32.totalorder %v219_v33, 0 }
  0xa4   : > { %v351_v35 = vsel %vm220_vm11, %v350_v34, 0.0 }
  0xa5   : > { %v223_v36 = vadd.f32 3e-06, %v351_v35 }
  0xa7   : > { %406 = vrcp.f32 %v223_v36 }
  0xb4   : > { %v407_v37 = vpop.eup %406 }
  0xb5   : > { %v225_v38 = vmul.f32 %v407_v37, %v223_v36 }
  0xb7   : > { %v226_v42 = vsub.f32 2.0, %v225_v38 }
  0xb9   : > { %v227_v48 = vmul.f32 %v407_v37, %v226_v42 }
 0x10c   : > { %v190_v39 = vpop.permute.xlu1 %189 }
 0x10d   : > { %v193_v40 = vsel %vm188_vm12, %v190_v39, 0.0 }
 0x10e   : > { %v195_v41 = vmul.f32 %v193_v40, %v193_v40  ;;  %v194_v44 = vadd.f32 %v193_v40, %v186_v25 }
 0x110   : > { %v199_v45 = vpop.permute.xlu1 %198  ;;  %v196_v47 = vadd.f32 %v195_v41, %v187_v43 }
 0x111   : > { %v202_v46 = vsel %vm197_vm13, %v199_v45, 0.0 }
 0x112   : > { %v203_v49 = vadd.f32 %v202_v46, %v194_v44  ;;  %v204_v50 = vmul.f32 %v202_v46, %v202_v46 }
 0x114   : > { %v205_v51 = vadd.f32 %v204_v50, %v196_v47  ;;  %v228_v52 = vmul.f32 %v227_v48, %v203_v49 }
 0x116   : > { %v229_v53 = vmul.f32 %v227_v48, %v205_v51  ;;  %v230_v54 = vmul.f32 %v228_v52, %v228_v52  ;;  %v232_v57 = vsub.f32 %v156_v23, %v228_v52 }
 0x118   : > { %v231_v55 = vsub.f32 %v229_v53, %v230_v54 }
 0x11a   : > { %v233_v56 = vadd.f32 0.001, %v231_v55 }
 0x11c   : > { %408 = vrsqrt.f32 %v233_v56 }
 0x11d   : > { %v244_v61 = vpop.permute.xlu1 %243 }
 0x129   : > { %v409_v58 = vpop.eup %408 }
 0x12a   : > { %v235_v60 = vmul.f32 %v409_v58, %v232_v57 }
 0x12c   : > { %v241_v62 = vmul.f32 %v239_v59, %v235_v60 }
 0x12e   : > { %v246_v63 = vadd.f32 %v244_v61, %v241_v62 }
 0x130   : > { %v247_v0 = vsel %vm185_vm7, %v246_v63, 0.0 }
 0x131   : > { %248 = vst [vmem:[%s147_s6] sm:$0xff] %v247_v0 }
 0x132   : > { %423 = shalt.err (!%p420_p3)
}
 0x133   : > { %s424_s24 = scalar_lea.hbm %s570_s16, 128  ;;  %s428_s27 = scalar_lea.hbm %s609_s2, 256 }
 0x134   : > { %p425_p4 = scmp.ne.s32.totalorder %s570_s16, %s424_s24  ;;  %p429_p9 = scmp.lt.s32.totalorder %s570_s16, %s609_s2 }
 0x135   : > { %p430_p10 = scmp.lt.s32.totalorder %s428_s27, %s424_s24 }
 0x136   : > { %p426_p7 = pnand %p425_p4, %p531_p5 }
 0x137   : > { %p431_p11 = por %p430_p10, %p429_p9 }
 0x138   : > { %p427_p8 = pneg %p426_p7 }
 0x13a   : > { %p432_p12 = pnand %p431_p11, %p427_p8 }
 0x13c   : > { %435 = shalt.err (!%p432_p12)
}
 0x13d   : > { %358 = dma.vmem_to_hbm [thread:$0]  (%p531_p5), %s264_s7, 128, %s570_s16, %s250_s17  }
 0x13e PF: > { %p364_p13 = scmp.ge.s32.totalorder %s470_s12, 2  ;;  %s275_s30 = sand.u32 1, %s458_s9  }
 0x13f   : > { %s276_s3 = scalar_lea.sflag [#allocation3], %s275_s30 }
 0x140   : > { %p361_p0 = pnand %p364_p13, %p535_p6 }
 0x142   : > { %p362_p1 = pneg %p361_p0 }
 0x144   : > { %453 = dma.done.wait (%p362_p1), %s276_s3, 128  }
 0x145   : > { %455 = vsyncadd (%p362_p1), %s276_s3, 4294967168  ;;  %p12_p2 = scmp.ge.s32.totalorder %s518_s15, 4   ;;  %s612_s9 = smov %s462_s10 }
 0x146   : > { %s613_s10 = smov %s466_s11  ;;  %s614_s11 = smov %s529_s18 }
 0x147   : > { %s615_s12 = smov %s518_s15  ;;  %14 = sbr.rel (!%p12_p2) target bundleno = 3 (0x3), region = 66 }
 0x14c   :  { %281 = vsyncpa [#allocation3], 1 }
 0x14d   :  { %283 = vsyncpa [#allocation3 + $0x1], 1 }

</bundles_post_ra>
